<compile_context>
chip_gen: v6e
topology: v6e:2x2x1
jax: 0.10.0
libtpu: 0.0.40
codegen_flags: <defaults>
</compile_context>

<pallas_src>
from functools import partial

import jax
import jax.numpy as jnp
import numpy as np
from jax.experimental import pallas as pl
from jax.experimental.pallas import tpu as pltpu


def _lstm_predictor_kernel(seq_len, x_ref, wih_ref, whh_ref, b_ref, wl_ref,
                           bl_ref, out_ref):
    """Entire forward pass in a single kernel invocation.

    x_ref   : (S*Bp, D)  bf16 inputs, t-major / batch-minor (row index = t*Bp + b)
    wih_ref : (D, 4H)    bf16 input->gate weights (PyTorch gate order i, f, g, o)
    whh_ref : (H, 4H)    bf16 hidden->gate weights
    b_ref   : (1, 4H)    f32 combined bias (b_ih + b_hh)
    wl_ref  : (O, H)     f32 final linear weight (PyTorch (O, H) layout)
    bl_ref  : (1, O)     f32 final linear bias
    out_ref : (Bp, O)    f32 predictions (padded batch)
    """
    S = seq_len
    SB, _ = x_ref.shape
    Bp = SB // S
    H = whh_ref.shape[0]
    O = wl_ref.shape[0]

    # ---- Hoisted input projection: ONE MXU matmul covering every (t, b) row.
    #      bf16 operands, f32 accumulation; bias added in f32. ----
    gates_x = (jnp.dot(x_ref[...], wih_ref[...],
                       preferred_element_type=jnp.float32)
               + b_ref[...])                                   # (S*Bp, 4H) f32

    whh = whh_ref[...]                                         # (H, 4H) bf16, VMEM-resident
    h = jnp.zeros((Bp, H), jnp.float32)
    c = jnp.zeros((Bp, H), jnp.float32)

    # ---- Serial recurrence, fully unrolled (S small & static). Only h @ W_hh is on
    #      the critical path; the t-major layout makes the per-step gate rows one
    #      contiguous, sublane-aligned static slice. ----
    # TODO(synk): if the per-step RHS push shows in the bundle dump, hold W_hh in the MXU
    # weight registers via pltpu.matmul_push_rhs / matmul_acc_lhs / matmul_pop.
    # TODO(synk): at larger S switch to lax.fori_loop(unroll=k) (or a t grid axis) to bound
    # vreg live ranges; at larger B add a batch grid axis with
    # dimension_semantics=("parallel",) to use both v7x TensorCores.
    for t in range(S):
        gx_t = gates_x[t * Bp:(t + 1) * Bp, :]                 # (Bp, 4H) static slice
        gates = gx_t + jnp.dot(h.astype(jnp.bfloat16), whh,
                               preferred_element_type=jnp.float32)

        # Two full-vreg EUP passes over the (Bp, 4H) = (8, 128) gates vreg, then cheap
        # static 32-lane slices — instead of four separate 32-lane transcendental calls.
        sig = jax.nn.sigmoid(gates)
        tnh = jnp.tanh(gates)
        i_g = sig[:, 0 * H:1 * H]
        f_g = sig[:, 1 * H:2 * H]
        g_g = tnh[:, 2 * H:3 * H]
        o_g = sig[:, 3 * H:4 * H]

        c = f_g * c + i_g * g_g
        h = o_g * jnp.tanh(c)

    # ---- Final Linear on the last hidden state. ----
    if O == 1:
        # VPU multiply + lane reduction (avoid an N=1 MXU matmul in the epilogue).
        # TODO(synk): for O > 1 at production widths, pad O to a lane-dense multiple of 128
        # and write a lane-dense slab instead of masked partial stores.
        out = jnp.sum(h * wl_ref[...], axis=-1, keepdims=True) + bl_ref[...]
    else:
        out = jax.lax.dot_general(h, wl_ref[...], (((1,), (1,)), ((), ())),
                                  preferred_element_type=jnp.float32) + bl_ref[...]
    out_ref[...] = out


@jax.jit
def stock_predictor_forward(x, params):
    """x: (B, S, D) float32 (PyTorch batch_first). Returns (B, O) float32."""
    B, S, D = x.shape
    wih, whh, b, wl, bl = params
    O = wl.shape[0]

    # Pad batch to a full 8-sublane vreg and lay rows out t-major so each timestep's
    # gate rows are one contiguous static slice inside the kernel. These reshuffles are
    # tiny XLA ops off the kernel's critical path.
    Bp = max(8, ((B + 7) // 8) * 8)
    x_p = jnp.pad(x, ((0, Bp - B), (0, 0), (0, 0)))
    x_tm = jnp.transpose(x_p, (1, 0, 2)).reshape(S * Bp, D)

    kernel = partial(_lstm_predictor_kernel, S)

    # TODO(synk): at production hidden_dim/seq, tile gates_x over S (or recompute per chunk),
    # set pltpu.CompilerParams(vmem_limit_bytes=...) against v7x's 64 MiB VMEM, and shard the
    # batch across v7x's two TensorCores; unnecessary at these toy sizes.
    out = pl.pallas_call(
        kernel,
        out_shape=jax.ShapeDtypeStruct((Bp, O), jnp.float32),
        in_specs=[pl.BlockSpec(memory_space=pltpu.MemorySpace.VMEM)] * 6,
        out_specs=pl.BlockSpec(memory_space=pltpu.MemorySpace.VMEM),
    )(x_tm.astype(jnp.bfloat16),          # bf16 MXU operands, f32 accumulation
      wih.astype(jnp.bfloat16),
      whh.astype(jnp.bfloat16),
      b, wl, bl)
    return out[:B]


def init_params(key, input_dim, hidden_dim, output_dim=1):
    """Deterministic init matching PyTorch LSTM/Linear parameter shapes."""
    k = 1.0 / np.sqrt(hidden_dim)
    keys = jax.random.split(key, 6)
    # PyTorch shapes: weight_ih (4H, D), weight_hh (4H, H), biases (4H,)
    w_ih = jax.random.uniform(keys[0], (4 * hidden_dim, input_dim), jnp.float32, -k, k)
    w_hh = jax.random.uniform(keys[1], (4 * hidden_dim, hidden_dim), jnp.float32, -k, k)
    b_ih = jax.random.uniform(keys[2], (4 * hidden_dim,), jnp.float32, -k, k)
    b_hh = jax.random.uniform(keys[3], (4 * hidden_dim,), jnp.float32, -k, k)
    # Linear: weight (O, H), bias (O,)
    w_lin = jax.random.uniform(keys[4], (output_dim, hidden_dim), jnp.float32, -k, k)
    b_lin = jax.random.uniform(keys[5], (output_dim,), jnp.float32, -k, k)

    # Kernel layouts: right-multiplication for the LSTM, PyTorch (O, H) for the Linear.
    wih_t = jnp.transpose(w_ih)                      # (D, 4H)
    whh_t = jnp.transpose(w_hh)                      # (H, 4H)
    b = (b_ih + b_hh).reshape(1, 4 * hidden_dim)     # (1, 4H)
    wl = w_lin                                       # (O, H)
    bl = b_lin.reshape(1, output_dim)                # (1, O)
    return (wih_t, whh_t, b, wl, bl)


def reference_forward(x, params):
    """Pure-JAX f32 reference of the PyTorch forward (for verification)."""
    wih, whh, b, wl, bl = params
    B, S, D = x.shape
    H = whh.shape[0]
    h = jnp.zeros((B, H), jnp.float32)
    c = jnp.zeros((B, H), jnp.float32)
    for t in range(S):
        gates = x[:, t, :] @ wih + h @ whh + b
        i_g = jax.nn.sigmoid(gates[:, 0 * H:1 * H])
        f_g = jax.nn.sigmoid(gates[:, 1 * H:2 * H])
        g_g = jnp.tanh(gates[:, 2 * H:3 * H])
        o_g = jax.nn.sigmoid(gates[:, 3 * H:4 * H])
        c = f_g * c + i_g * g_g
        h = o_g * jnp.tanh(c)
    return h @ wl.T + bl


if __name__ == "__main__":
    batch, seq, input_dim, hidden_dim, output_dim = 2, 8, 4, 32, 1

    key = jax.random.PRNGKey(0)
    kx, kp = jax.random.split(key)
    x = jax.random.normal(kx, (batch, seq, input_dim), jnp.float32)
    params = init_params(kp, input_dim, hidden_dim, output_dim)

    out = stock_predictor_forward(x, params)
    out = jax.block_until_ready(out)

    ref = reference_forward(x, params)
    # Tolerance loosened vs. the pure-f32 version: kernel matmul operands are bf16
    # (f32 accumulation); gate/elementwise math stays f32.
    np.testing.assert_allclose(np.asarray(out), np.asarray(ref), rtol=3e-2, atol=3e-2)

    print("KERNEL_OK")
</pallas_src>

<mosaic_0001>
module attributes {stable_mosaic.version = 11 : i64} {
  func.func @_lstm_predictor_kernel(%arg0: memref<64x4xbf16, #tpu.memory_space<vmem>>, %arg1: memref<4x128xbf16, #tpu.memory_space<vmem>>, %arg2: memref<32x128xbf16, #tpu.memory_space<vmem>>, %arg3: memref<1x128xf32, #tpu.memory_space<vmem>>, %arg4: memref<1x32xf32, #tpu.memory_space<vmem>>, %arg5: memref<1x1xf32, #tpu.memory_space<vmem>>, %arg6: memref<8x1xf32, #tpu.memory_space<vmem>>) attributes {dimension_semantics = [], scalar_prefetch = 0 : i64, scratch_operands = 0 : i64, tpu.core_type = #tpu.core_type<tc>} {
    %c0 = arith.constant 0 : index
    %c0_0 = arith.constant 0 : index
    %0 = vector.load %arg0[%c0, %c0_0] : memref<64x4xbf16, #tpu.memory_space<vmem>>, vector<64x4xbf16>
    %c0_1 = arith.constant 0 : index
    %c0_2 = arith.constant 0 : index
    %1 = vector.load %arg1[%c0_1, %c0_2] : memref<4x128xbf16, #tpu.memory_space<vmem>>, vector<4x128xbf16>
    %cst = arith.constant dense<0.000000e+00> : vector<64x128xf32>
    %2 = tpu.matmul %0, %1, %cst {dimension_numbers = #tpu.dot_dimension_numbers<[1], [0], [0], [1], [0, 0, 1, 1], [], []>} : vector<64x4xbf16>, vector<4x128xbf16>, vector<64x128xf32> -> vector<64x128xf32>
    %c0_3 = arith.constant 0 : index
    %c0_4 = arith.constant 0 : index
    %3 = vector.load %arg3[%c0_3, %c0_4] : memref<1x128xf32, #tpu.memory_space<vmem>>, vector<1x128xf32>
    %4 = vector.broadcast %3 : vector<1x128xf32> to vector<64x128xf32>
    %5 = arith.addf %2, %4 : vector<64x128xf32>
    %c0_5 = arith.constant 0 : index
    %c0_6 = arith.constant 0 : index
    %6 = vector.load %arg2[%c0_5, %c0_6] : memref<32x128xbf16, #tpu.memory_space<vmem>>, vector<32x128xbf16>
    %cst_7 = arith.constant 0.000000e+00 : f32
    %7 = vector.broadcast %cst_7 : f32 to vector<8x32xf32>
    %cst_8 = arith.constant 0.000000e+00 : f32
    %8 = vector.broadcast %cst_8 : f32 to vector<8x32xf32>
    %9 = vector.extract_strided_slice %5 {offsets = [0, 0], sizes = [8, 128], strides = [1, 1]} : vector<64x128xf32> to vector<8x128xf32>
    %10 = arith.truncf %7 : vector<8x32xf32> to vector<8x32xbf16>
    %cst_9 = arith.constant dense<0.000000e+00> : vector<8x128xf32>
    %11 = tpu.matmul %10, %6, %cst_9 {dimension_numbers = #tpu.dot_dimension_numbers<[1], [0], [0], [1], [0, 0, 1, 1], [], []>} : vector<8x32xbf16>, vector<32x128xbf16>, vector<8x128xf32> -> vector<8x128xf32>
    %12 = arith.addf %9, %11 : vector<8x128xf32>
    %13 = arith.negf %12 : vector<8x128xf32>
    %14 = math.exp %13 : vector<8x128xf32>
    %cst_10 = arith.constant 1.000000e+00 : f32
    %15 = vector.broadcast %cst_10 : f32 to vector<8x128xf32>
    %16 = arith.addf %15, %14 : vector<8x128xf32>
    %17 = arith.divf %15, %16 : vector<8x128xf32>
    %18 = math.tanh %12 : vector<8x128xf32>
    %19 = vector.extract_strided_slice %17 {offsets = [0, 0], sizes = [8, 32], strides = [1, 1]} : vector<8x128xf32> to vector<8x32xf32>
    %20 = vector.extract_strided_slice %17 {offsets = [0, 32], sizes = [8, 32], strides = [1, 1]} : vector<8x128xf32> to vector<8x32xf32>
    %21 = vector.extract_strided_slice %18 {offsets = [0, 64], sizes = [8, 32], strides = [1, 1]} : vector<8x128xf32> to vector<8x32xf32>
    %22 = vector.extract_strided_slice %17 {offsets = [0, 96], sizes = [8, 32], strides = [1, 1]} : vector<8x128xf32> to vector<8x32xf32>
    %23 = arith.mulf %20, %8 : vector<8x32xf32>
    %24 = arith.mulf %19, %21 : vector<8x32xf32>
    %25 = arith.addf %23, %24 : vector<8x32xf32>
    %26 = math.tanh %25 : vector<8x32xf32>
    %27 = arith.mulf %22, %26 : vector<8x32xf32>
    %28 = vector.extract_strided_slice %5 {offsets = [8, 0], sizes = [8, 128], strides = [1, 1]} : vector<64x128xf32> to vector<8x128xf32>
    %29 = arith.truncf %27 : vector<8x32xf32> to vector<8x32xbf16>
    %cst_11 = arith.constant dense<0.000000e+00> : vector<8x128xf32>
    %30 = tpu.matmul %29, %6, %cst_11 {dimension_numbers = #tpu.dot_dimension_numbers<[1], [0], [0], [1], [0, 0, 1, 1], [], []>} : vector<8x32xbf16>, vector<32x128xbf16>, vector<8x128xf32> -> vector<8x128xf32>
    %31 = arith.addf %28, %30 : vector<8x128xf32>
    %32 = arith.negf %31 : vector<8x128xf32>
    %33 = math.exp %32 : vector<8x128xf32>
    %cst_12 = arith.constant 1.000000e+00 : f32
    %34 = vector.broadcast %cst_12 : f32 to vector<8x128xf32>
    %35 = arith.addf %34, %33 : vector<8x128xf32>
    %36 = arith.divf %34, %35 : vector<8x128xf32>
    %37 = math.tanh %31 : vector<8x128xf32>
    %38 = vector.extract_strided_slice %36 {offsets = [0, 0], sizes = [8, 32], strides = [1, 1]} : vector<8x128xf32> to vector<8x32xf32>
    %39 = vector.extract_strided_slice %36 {offsets = [0, 32], sizes = [8, 32], strides = [1, 1]} : vector<8x128xf32> to vector<8x32xf32>
    %40 = vector.extract_strided_slice %37 {offsets = [0, 64], sizes = [8, 32], strides = [1, 1]} : vector<8x128xf32> to vector<8x32xf32>
    %41 = vector.extract_strided_slice %36 {offsets = [0, 96], sizes = [8, 32], strides = [1, 1]} : vector<8x128xf32> to vector<8x32xf32>
    %42 = arith.mulf %39, %25 : vector<8x32xf32>
    %43 = arith.mulf %38, %40 : vector<8x32xf32>
    %44 = arith.addf %42, %43 : vector<8x32xf32>
    %45 = math.tanh %44 : vector<8x32xf32>
    %46 = arith.mulf %41, %45 : vector<8x32xf32>
    %47 = vector.extract_strided_slice %5 {offsets = [16, 0], sizes = [8, 128], strides = [1, 1]} : vector<64x128xf32> to vector<8x128xf32>
    %48 = arith.truncf %46 : vector<8x32xf32> to vector<8x32xbf16>
    %cst_13 = arith.constant dense<0.000000e+00> : vector<8x128xf32>
    %49 = tpu.matmul %48, %6, %cst_13 {dimension_numbers = #tpu.dot_dimension_numbers<[1], [0], [0], [1], [0, 0, 1, 1], [], []>} : vector<8x32xbf16>, vector<32x128xbf16>, vector<8x128xf32> -> vector<8x128xf32>
    %50 = arith.addf %47, %49 : vector<8x128xf32>
    %51 = arith.negf %50 : vector<8x128xf32>
    %52 = math.exp %51 : vector<8x128xf32>
    %cst_14 = arith.constant 1.000000e+00 : f32
    %53 = vector.broadcast %cst_14 : f32 to vector<8x128xf32>
    %54 = arith.addf %53, %52 : vector<8x128xf32>
    %55 = arith.divf %53, %54 : vector<8x128xf32>
    %56 = math.tanh %50 : vector<8x128xf32>
    %57 = vector.extract_strided_slice %55 {offsets = [0, 0], sizes = [8, 32], strides = [1, 1]} : vector<8x128xf32> to vector<8x32xf32>
    %58 = vector.extract_strided_slice %55 {offsets = [0, 32], sizes = [8, 32], strides = [1, 1]} : vector<8x128xf32> to vector<8x32xf32>
    %59 = vector.extract_strided_slice %56 {offsets = [0, 64], sizes = [8, 32], strides = [1, 1]} : vector<8x128xf32> to vector<8x32xf32>
    %60 = vector.extract_strided_slice %55 {offsets = [0, 96], sizes = [8, 32], strides = [1, 1]} : vector<8x128xf32> to vector<8x32xf32>
    %61 = arith.mulf %58, %44 : vector<8x32xf32>
    %62 = arith.mulf %57, %59 : vector<8x32xf32>
    %63 = arith.addf %61, %62 : vector<8x32xf32>
    %64 = math.tanh %63 : vector<8x32xf32>
    %65 = arith.mulf %60, %64 : vector<8x32xf32>
    %66 = vector.extract_strided_slice %5 {offsets = [24, 0], sizes = [8, 128], strides = [1, 1]} : vector<64x128xf32> to vector<8x128xf32>
    %67 = arith.truncf %65 : vector<8x32xf32> to vector<8x32xbf16>
    %cst_15 = arith.constant dense<0.000000e+00> : vector<8x128xf32>
    %68 = tpu.matmul %67, %6, %cst_15 {dimension_numbers = #tpu.dot_dimension_numbers<[1], [0], [0], [1], [0, 0, 1, 1], [], []>} : vector<8x32xbf16>, vector<32x128xbf16>, vector<8x128xf32> -> vector<8x128xf32>
    %69 = arith.addf %66, %68 : vector<8x128xf32>
    %70 = arith.negf %69 : vector<8x128xf32>
    %71 = math.exp %70 : vector<8x128xf32>
    %cst_16 = arith.constant 1.000000e+00 : f32
    %72 = vector.broadcast %cst_16 : f32 to vector<8x128xf32>
    %73 = arith.addf %72, %71 : vector<8x128xf32>
    %74 = arith.divf %72, %73 : vector<8x128xf32>
    %75 = math.tanh %69 : vector<8x128xf32>
    %76 = vector.extract_strided_slice %74 {offsets = [0, 0], sizes = [8, 32], strides = [1, 1]} : vector<8x128xf32> to vector<8x32xf32>
    %77 = vector.extract_strided_slice %74 {offsets = [0, 32], sizes = [8, 32], strides = [1, 1]} : vector<8x128xf32> to vector<8x32xf32>
    %78 = vector.extract_strided_slice %75 {offsets = [0, 64], sizes = [8, 32], strides = [1, 1]} : vector<8x128xf32> to vector<8x32xf32>
    %79 = vector.extract_strided_slice %74 {offsets = [0, 96], sizes = [8, 32], strides = [1, 1]} : vector<8x128xf32> to vector<8x32xf32>
    %80 = arith.mulf %77, %63 : vector<8x32xf32>
    %81 = arith.mulf %76, %78 : vector<8x32xf32>
    %82 = arith.addf %80, %81 : vector<8x32xf32>
    %83 = math.tanh %82 : vector<8x32xf32>
    %84 = arith.mulf %79, %83 : vector<8x32xf32>
    %85 = vector.extract_strided_slice %5 {offsets = [32, 0], sizes = [8, 128], strides = [1, 1]} : vector<64x128xf32> to vector<8x128xf32>
    %86 = arith.truncf %84 : vector<8x32xf32> to vector<8x32xbf16>
    %cst_17 = arith.constant dense<0.000000e+00> : vector<8x128xf32>
    %87 = tpu.matmul %86, %6, %cst_17 {dimension_numbers = #tpu.dot_dimension_numbers<[1], [0], [0], [1], [0, 0, 1, 1], [], []>} : vector<8x32xbf16>, vector<32x128xbf16>, vector<8x128xf32> -> vector<8x128xf32>
    %88 = arith.addf %85, %87 : vector<8x128xf32>
    %89 = arith.negf %88 : vector<8x128xf32>
    %90 = math.exp %89 : vector<8x128xf32>
    %cst_18 = arith.constant 1.000000e+00 : f32
    %91 = vector.broadcast %cst_18 : f32 to vector<8x128xf32>
    %92 = arith.addf %91, %90 : vector<8x128xf32>
    %93 = arith.divf %91, %92 : vector<8x128xf32>
    %94 = math.tanh %88 : vector<8x128xf32>
    %95 = vector.extract_strided_slice %93 {offsets = [0, 0], sizes = [8, 32], strides = [1, 1]} : vector<8x128xf32> to vector<8x32xf32>
    %96 = vector.extract_strided_slice %93 {offsets = [0, 32], sizes = [8, 32], strides = [1, 1]} : vector<8x128xf32> to vector<8x32xf32>
    %97 = vector.extract_strided_slice %94 {offsets = [0, 64], sizes = [8, 32], strides = [1, 1]} : vector<8x128xf32> to vector<8x32xf32>
    %98 = vector.extract_strided_slice %93 {offsets = [0, 96], sizes = [8, 32], strides = [1, 1]} : vector<8x128xf32> to vector<8x32xf32>
    %99 = arith.mulf %96, %82 : vector<8x32xf32>
    %100 = arith.mulf %95, %97 : vector<8x32xf32>
    %101 = arith.addf %99, %100 : vector<8x32xf32>
    %102 = math.tanh %101 : vector<8x32xf32>
    %103 = arith.mulf %98, %102 : vector<8x32xf32>
    %104 = vector.extract_strided_slice %5 {offsets = [40, 0], sizes = [8, 128], strides = [1, 1]} : vector<64x128xf32> to vector<8x128xf32>
    %105 = arith.truncf %103 : vector<8x32xf32> to vector<8x32xbf16>
    %cst_19 = arith.constant dense<0.000000e+00> : vector<8x128xf32>
    %106 = tpu.matmul %105, %6, %cst_19 {dimension_numbers = #tpu.dot_dimension_numbers<[1], [0], [0], [1], [0, 0, 1, 1], [], []>} : vector<8x32xbf16>, vector<32x128xbf16>, vector<8x128xf32> -> vector<8x128xf32>
    %107 = arith.addf %104, %106 : vector<8x128xf32>
    %108 = arith.negf %107 : vector<8x128xf32>
    %109 = math.exp %108 : vector<8x128xf32>
    %cst_20 = arith.constant 1.000000e+00 : f32
    %110 = vector.broadcast %cst_20 : f32 to vector<8x128xf32>
    %111 = arith.addf %110, %109 : vector<8x128xf32>
    %112 = arith.divf %110, %111 : vector<8x128xf32>
    %113 = math.tanh %107 : vector<8x128xf32>
    %114 = vector.extract_strided_slice %112 {offsets = [0, 0], sizes = [8, 32], strides = [1, 1]} : vector<8x128xf32> to vector<8x32xf32>
    %115 = vector.extract_strided_slice %112 {offsets = [0, 32], sizes = [8, 32], strides = [1, 1]} : vector<8x128xf32> to vector<8x32xf32>
    %116 = vector.extract_strided_slice %113 {offsets = [0, 64], sizes = [8, 32], strides = [1, 1]} : vector<8x128xf32> to vector<8x32xf32>
    %117 = vector.extract_strided_slice %112 {offsets = [0, 96], sizes = [8, 32], strides = [1, 1]} : vector<8x128xf32> to vector<8x32xf32>
    %118 = arith.mulf %115, %101 : vector<8x32xf32>
    %119 = arith.mulf %114, %116 : vector<8x32xf32>
    %120 = arith.addf %118, %119 : vector<8x32xf32>
    %121 = math.tanh %120 : vector<8x32xf32>
    %122 = arith.mulf %117, %121 : vector<8x32xf32>
    %123 = vector.extract_strided_slice %5 {offsets = [48, 0], sizes = [8, 128], strides = [1, 1]} : vector<64x128xf32> to vector<8x128xf32>
    %124 = arith.truncf %122 : vector<8x32xf32> to vector<8x32xbf16>
    %cst_21 = arith.constant dense<0.000000e+00> : vector<8x128xf32>
    %125 = tpu.matmul %124, %6, %cst_21 {dimension_numbers = #tpu.dot_dimension_numbers<[1], [0], [0], [1], [0, 0, 1, 1], [], []>} : vector<8x32xbf16>, vector<32x128xbf16>, vector<8x128xf32> -> vector<8x128xf32>
    %126 = arith.addf %123, %125 : vector<8x128xf32>
    %127 = arith.negf %126 : vector<8x128xf32>
    %128 = math.exp %127 : vector<8x128xf32>
    %cst_22 = arith.constant 1.000000e+00 : f32
    %129 = vector.broadcast %cst_22 : f32 to vector<8x128xf32>
    %130 = arith.addf %129, %128 : vector<8x128xf32>
    %131 = arith.divf %129, %130 : vector<8x128xf32>
    %132 = math.tanh %126 : vector<8x128xf32>
    %133 = vector.extract_strided_slice %131 {offsets = [0, 0], sizes = [8, 32], strides = [1, 1]} : vector<8x128xf32> to vector<8x32xf32>
    %134 = vector.extract_strided_slice %131 {offsets = [0, 32], sizes = [8, 32], strides = [1, 1]} : vector<8x128xf32> to vector<8x32xf32>
    %135 = vector.extract_strided_slice %132 {offsets = [0, 64], sizes = [8, 32], strides = [1, 1]} : vector<8x128xf32> to vector<8x32xf32>
    %136 = vector.extract_strided_slice %131 {offsets = [0, 96], sizes = [8, 32], strides = [1, 1]} : vector<8x128xf32> to vector<8x32xf32>
    %137 = arith.mulf %134, %120 : vector<8x32xf32>
    %138 = arith.mulf %133, %135 : vector<8x32xf32>
    %139 = arith.addf %137, %138 : vector<8x32xf32>
    %140 = math.tanh %139 : vector<8x32xf32>
    %141 = arith.mulf %136, %140 : vector<8x32xf32>
    %142 = vector.extract_strided_slice %5 {offsets = [56, 0], sizes = [8, 128], strides = [1, 1]} : vector<64x128xf32> to vector<8x128xf32>
    %143 = arith.truncf %141 : vector<8x32xf32> to vector<8x32xbf16>
    %cst_23 = arith.constant dense<0.000000e+00> : vector<8x128xf32>
    %144 = tpu.matmul %143, %6, %cst_23 {dimension_numbers = #tpu.dot_dimension_numbers<[1], [0], [0], [1], [0, 0, 1, 1], [], []>} : vector<8x32xbf16>, vector<32x128xbf16>, vector<8x128xf32> -> vector<8x128xf32>
    %145 = arith.addf %142, %144 : vector<8x128xf32>
    %146 = arith.negf %145 : vector<8x128xf32>
    %147 = math.exp %146 : vector<8x128xf32>
    %cst_24 = arith.constant 1.000000e+00 : f32
    %148 = vector.broadcast %cst_24 : f32 to vector<8x128xf32>
    %149 = arith.addf %148, %147 : vector<8x128xf32>
    %150 = arith.divf %148, %149 : vector<8x128xf32>
    %151 = math.tanh %145 : vector<8x128xf32>
    %152 = vector.extract_strided_slice %150 {offsets = [0, 0], sizes = [8, 32], strides = [1, 1]} : vector<8x128xf32> to vector<8x32xf32>
    %153 = vector.extract_strided_slice %150 {offsets = [0, 32], sizes = [8, 32], strides = [1, 1]} : vector<8x128xf32> to vector<8x32xf32>
    %154 = vector.extract_strided_slice %151 {offsets = [0, 64], sizes = [8, 32], strides = [1, 1]} : vector<8x128xf32> to vector<8x32xf32>
    %155 = vector.extract_strided_slice %150 {offsets = [0, 96], sizes = [8, 32], strides = [1, 1]} : vector<8x128xf32> to vector<8x32xf32>
    %156 = arith.mulf %153, %139 : vector<8x32xf32>
    %157 = arith.mulf %152, %154 : vector<8x32xf32>
    %158 = arith.addf %156, %157 : vector<8x32xf32>
    %159 = math.tanh %158 : vector<8x32xf32>
    %160 = arith.mulf %155, %159 : vector<8x32xf32>
    %c0_25 = arith.constant 0 : index
    %c0_26 = arith.constant 0 : index
    %161 = vector.load %arg4[%c0_25, %c0_26] : memref<1x32xf32, #tpu.memory_space<vmem>>, vector<1x32xf32>
    %162 = vector.broadcast %161 : vector<1x32xf32> to vector<8x32xf32>
    %163 = arith.mulf %160, %162 : vector<8x32xf32>
    %cst_27 = arith.constant dense<0.000000e+00> : vector<8xf32>
    %164 = vector.multi_reduction <add>, %163, %cst_27 [1] : vector<8x32xf32> to vector<8xf32>
    %165 = vector.shape_cast %164 : vector<8xf32> to vector<8x1xf32>
    %c0_28 = arith.constant 0 : index
    %c0_29 = arith.constant 0 : index
    %166 = vector.load %arg5[%c0_28, %c0_29] : memref<1x1xf32, #tpu.memory_space<vmem>>, vector<1x1xf32>
    %167 = vector.broadcast %166 : vector<1x1xf32> to vector<8x1xf32>
    %168 = arith.addf %165, %167 : vector<8x1xf32>
    %c0_30 = arith.constant 0 : index
    %c0_31 = arith.constant 0 : index
    %169 = vector.load %arg6[%c0_30, %c0_31] : memref<8x1xf32, #tpu.memory_space<vmem>>, vector<8x1xf32>
    tpu.vector_store %arg6[%c0_30, %c0_31], %168 {strides = array<i32>} : memref<8x1xf32, #tpu.memory_space<vmem>>, vector<8x1xf32>,
    return
  }
}

</mosaic_0001>

<bundles_post_ra>
// kernel: stock_predictor_forward.1
= control target key start
LH: loop header
LB: loop body
LE: loop exit
PB: predicated region body
PF: predicated region fallthrough
CT: control target
= control target key end

     0   :  { %vm75_vm0 = vcmask 1041408   ;;  %vm62_vm1 = vcmask 31744   ;;  %v972_v1 = vmov 0.0   ;;  %vm973_vm2 = vmmov 0   ;;  %s975_s7 = smov 64   ;;  %s977_s13 = smov 96   ;;  %s1170_s1 = inlined_call_operand.vmem [shape: bf16[4,128], index: 1, kind: input, shape index: {}]   ;;  %s1171_s2 = inlined_call_operand.vmem [shape: bf16[32,128], index: 2, kind: input, shape index: {}]   ;;  %s1172_s0 = inlined_call_operand.vmem [shape: bf16[64,4], index: 0, kind: input, shape index: {}]   ;;  %s1173_s3 = inlined_call_operand.vmem [shape: f32[1,128], index: 3, kind: input, shape index: {}]   ;;  %s1174_s4 = inlined_call_operand.vmem [shape: f32[1,32], index: 4, kind: input, shape index: {}]   ;;  %s1175_s5 = inlined_call_operand.<no memory space> [shape: f32[1,1], index: 5, kind: input, shape index: {}]   ;;  %s1176_s6 = inlined_call_operand.vmem [shape: f32[8,1], index: 6, kind: output, shape index: {}]  }
   0x1   :  { %v34_v0 = vld [vmem:[%s1170_s1] sm:$0x3]  ;;  %831 = vmatprep.subr.bf16.mxu1 %v972_v1  ;;  %835 = vmatprep.mubr.msk.bf16.mxu1 %vm973_vm2, %v972_v1  ;;  %v1022_v3 = vld [vmem:[%s1171_s2 + $0x8] sm:$0xff]   ;;  %v974_v7 = vmov 0   ;;  %vm160_vm3 = vcmask 261120   ;;  %v906_v50 = vld [vmem:[%s1172_s0 + $0x10] sm:$0xff]  }
   0x2   :  { %895 = vmatprep.subr.msk.bf16.mxu0 %vm75_vm0, %v34_v0  ;;  %v77_v2 = vsel %vm75_vm0, %v34_v0, 0  ;;  %v903_v4 = vld [vmem:[%s1172_s0] sm:$0xff]   ;;  %832 = vmatpush3.bf16.msra.mxu1 %v1022_v3  ;;  %v904_v5 = vld [vmem:[%s1172_s0 + $0x8] sm:$0xff]   ;;  %v907_v51 = vld [vmem:[%s1172_s0 + $0x18] sm:$0xff]   ;;  %vm758_vm4 = vcmask 7168  }
   0x3   :  { %822 = vmatpush3.bf16.msra.mxu0 %v77_v2  ;;  %823 = vmatprep.mubr.msk.bf16.mxu0 %vm62_vm1, %v903_v4  ;;  %v1037_v6 = vld [vmem:[%s1171_s2] sm:$0xff]  }
   0x4   :  { %847 = vmatprep.subr.bf16.mxu0 %v972_v1  ;;  %833 = vmatprep.subr.bf16.mxu1 %v972_v1  ;;  %v1057_v9 = vld [vmem:[%s1173_s3] ss:$0 sm:$0xff]  ;;  %s976_s3 = smov 32  }
   0x6   :  { %824 = vmatmul.mubr.msk.bf16.vlgmr.msra.gmra.mxu0 %vm62_vm1, %v904_v5  ;;  %834 = vmatpush3.bf16.msra.mxu1 %v1037_v6 }
   0x7   :  { %848 = vmatpush3.bf16.msra.mxu0 %v1022_v3  ;;  %839 = vmatprep.subr.bf16.mxu1 %v972_v1 }
   0x8   :  { %849 = vmatprep.subr.bf16.mxu0 %v972_v1  ;;  %827 = vmatprep.mubr.msk.bf16.mxu0 %vm62_vm1, %v906_v50 }
   0x9   :  { %836 = vmatmul.mubr.bf16.vlgmr.msra.gmra.mxu1 %v974_v7 }
   0xa   :  { %840 = vmatpush3.bf16.msra.mxu1 %v1022_v3  ;;  %843 = vmatprep.mubr.msk.bf16.mxu1 %vm973_vm2, %v972_v1 }
   0xb   :  { %850 = vmatpush3.bf16.msra.mxu0 %v1037_v6  ;;  %841 = vmatprep.subr.bf16.mxu1 %v972_v1 }
   0xc   :  { %863 = vmatprep.subr.bf16.mxu0 %v972_v1 }
   0xe   :  { %842 = vmatpush3.bf16.msra.mxu1 %v1037_v6  ;;  %828 = vmatmul.mubr.msk.bf16.gmra.mxu0 %vm62_vm1, %v907_v51 }
   0xf   :  { %855 = vmatprep.subr.bf16.mxu1 %v972_v1  ;;  %851 = vmatprep.mubr.msk.bf16.mxu0 %vm973_vm2, %v972_v1 }
  0xc6   :  { %v1052_v8 = vpop.f32.mrf.mxu0 }
  0xc7   :  { %v122_v61 = vadd.f32 %v1052_v8, %v1057_v9 }
  0xc8   :  { %v113_v10 = vpop.f32.mrf.mxu0 }
  0xc9   :  { %v114_v11 = vadd.f32 %v1057_v9, %v113_v10  ;;  %v198_v12 = vpop.f32.mrf.mxu1 }
  0xca   :  { %v1071_v32 = vpop.f32.mrf.mxu0 }
  0xcb   :  { %v204_v13 = vadd.f32 %v198_v12, %v114_v11  ;;  %v837_v14 = vpop.f32.mrf.mxu1 }
  0xcc   :  { %v116_v33 = vpop.f32.mrf.mxu0 }
  0xcd   :  { %908 = vtanh.f32 %v204_v13  ;;  %v201_v15 = vpop.f32.mrf.mxu1  ;;  %v775_v18 = vmul.f32 -1.442695, %v204_v13  ;;  %v117_v34 = vadd.f32 %v1057_v9, %v116_v33 }
  0xce   :  { %v1095_v57 = vpop.f32.mrf.mxu0 }
  0xcf   :  { %v838_v16 = vpop.f32.mrf.mxu1  ;;  %910 = vpow2.f32 %v775_v18 }
  0xd0   :  { %v1097_v58 = vpop.f32.mrf.mxu0 }
  0xd2   :  { %v1099_v59 = vpop.f32.mrf.mxu0 }
  0xd4   :  { %v1101_v60 = vpop.f32.mrf.mxu0 }
  0xda   :  { %v909_v17 = vpop.eup %908 }
  0xdb   :  { %214 = vrot.lane.b32.xlu0 %v909_v17, %s975_s7 }
  0xdc   :  { %v911_v19 = vpop.eup %910 }
  0xdd   :  { %v208_v20 = vadd.f32 1.0, %v911_v19 }
  0xdf   :  { %912 = vrcp.f32 %v208_v20 }
  0xec   :  { %v913_v21 = vpop.eup %912 }
  0xed   :  { %v212_v24 = vmul.f32 0.0, %v913_v21 }
 0x14d   :  { %v215_v22 = vpop.permute.xlu0 %214 }
 0x14e   :  { %v217_v23 = vmul.f32 %v913_v21, %v215_v22  ;;  %v125_v22 = vadd.f32 %v1071_v32, %v1057_v9 }
 0x150   :  { %219 = vrot.lane.b32.xlu0 %v217_v23, %s976_s3 }
 0x1c2   :  { %v220_v25 = vpop.permute.xlu0 %219 }
 0x1c3   :  { %v222_v26 = vadd.f32 %v220_v25, %v212_v24 }
 0x1c5   :  { %914 = vtanh.f32 %v222_v26 }
 0x1d2   :  { %v915_v27 = vpop.eup %914 }
 0x1d3   :  { %225 = vrot.lane.b32.xlu1 %v915_v27, %s975_s7 }
 0x245   :  { %v226_v28 = vpop.permute.xlu1 %225 }
 0x246   :  { %v228_v29 = vmul.f32 %v913_v21, %v226_v28 }
 0x248   :  { %v229_v30 = vpack.c.bf16 %v228_v29, %v228_v29 }
 0x24a   :  { %231 = vrot.lane.b32.xlu1 %v229_v30, %s976_s3 }
 0x2bc   :  { %v232_v31 = vpop.permute.xlu1 %231 }
 0x2bd   :  { %844 = vmatmul.mubr.msk.bf16.vlgmr.msra.gmra.mxu1 %vm160_vm3, %v232_v31 }
 0x2be   :  { %856 = vmatpush3.bf16.msra.mxu1 %v1022_v3  ;;  %859 = vmatprep.mubr.msk.bf16.mxu1 %vm973_vm2, %v972_v1 }
 0x2bf   :  { %857 = vmatprep.subr.bf16.mxu1 %v972_v1 }
 0x2c2   :  { %858 = vmatpush3.bf16.msra.mxu1 %v1037_v6 }
 0x2c3   :  { %871 = vmatprep.subr.bf16.mxu1 %v972_v1 }
 0x37d   :  { %v270_v35 = vpop.f32.mrf.mxu1 }
 0x37e   :  { %v276_v36 = vadd.f32 %v270_v35, %v117_v34 }
 0x37f   :  { %v845_v37 = vpop.f32.mrf.mxu1 }
 0x380   :  { %916 = vtanh.f32 %v276_v36  ;;  %v777_v41 = vmul.f32 -1.442695, %v276_v36 }
 0x381   :  { %v273_v38 = vpop.f32.mrf.mxu1 }
 0x382   :  { %918 = vpow2.f32 %v777_v41 }
 0x383   :  { %v846_v39 = vpop.f32.mrf.mxu1 }
 0x38d   :  { %v917_v40 = vpop.eup %916 }
 0x38e   :  { %286 = vrot.lane.b32.xlu0 %v917_v40, %s975_s7 }
 0x38f   :  { %v919_v42 = vpop.eup %918 }
 0x390   :  { %v280_v43 = vadd.f32 1.0, %v919_v42 }
 0x392   :  { %920 = vrcp.f32 %v280_v43  ;;  %v130_v43 = vadd.f32 %v1057_v9, %v1097_v58 }
 0x39f   :  { %v921_v44 = vpop.eup %920 }
 0x3a0   :  { %v284_v47 = vmul.f32 %v921_v44, %v222_v26 }
 0x400   :  { %v287_v45 = vpop.permute.xlu0 %286 }
 0x401   :  { %v289_v46 = vmul.f32 %v921_v44, %v287_v45 }
 0x403   :  { %291 = vrot.lane.b32.xlu1 %v289_v46, %s976_s3 }
 0x475   :  { %v292_v48 = vpop.permute.xlu1 %291 }
 0x476   :  { %v294_v49 = vadd.f32 %v292_v48, %v284_v47 }
 0x478   :  { %922 = vtanh.f32 %v294_v49 }
 0x485   :  { %v923_v52 = vpop.eup %922 }
 0x486   :  { %297 = vrot.lane.b32.xlu0 %v923_v52, %s975_s7 }
 0x4f8   :  { %v298_v53 = vpop.permute.xlu0 %297 }
 0x4f9   :  { %v300_v54 = vmul.f32 %v921_v44, %v298_v53 }
 0x4fb   :  { %v301_v55 = vpack.c.bf16 %v300_v54, %v300_v54 }
 0x4fd   :  { %303 = vrot.lane.b32.xlu1 %v301_v55, %s976_s3 }
 0x56f   :  { %v304_v56 = vpop.permute.xlu1 %303 }
 0x570   :  { %852 = vmatmul.mubr.msk.bf16.vlgmr.msra.gmra.mxu0 %vm160_vm3, %v304_v56 }
 0x571   :  { %864 = vmatpush3.bf16.msra.mxu0 %v1022_v3  ;;  %867 = vmatprep.mubr.msk.bf16.mxu0 %vm973_vm2, %v972_v1 }
 0x572   :  { %865 = vmatprep.subr.bf16.mxu0 %v972_v1 }
 0x575   :  { %866 = vmatpush3.bf16.msra.mxu0 %v1037_v6 }
 0x576   :  { %879 = vmatprep.subr.bf16.mxu0 %v972_v1 }
 0x630   :  { %v342_v62 = vpop.f32.mrf.mxu0 }
 0x631   :  { %v348_v63 = vadd.f32 %v342_v62, %v122_v61 }
 0x632   :  { %v853_v0 = vpop.f32.mrf.mxu0 }
 0x633   :  { %924 = vtanh.f32 %v348_v63  ;;  %v779_v7 = vmul.f32 -1.442695, %v348_v63 }
 0x634   :  { %v345_v2 = vpop.f32.mrf.mxu0 }
 0x635   :  { %926 = vpow2.f32 %v779_v7 }
 0x636   :  { %v854_v4 = vpop.f32.mrf.mxu0 }
 0x640   :  { %v925_v5 = vpop.eup %924 }
 0x641   :  { %358 = vrot.lane.b32.xlu0 %v925_v5, %s975_s7  ;;  %v133_v5 = vadd.f32 %v1057_v9, %v1101_v60 }
 0x642   :  { %v927_v10 = vpop.eup %926 }
 0x643   :  { %v352_v11 = vadd.f32 1.0, %v927_v10 }
 0x645   :  { %928 = vrcp.f32 %v352_v11 }
 0x652   :  { %v929_v12 = vpop.eup %928 }
 0x653   :  { %v356_v8 = vmul.f32 %v929_v12, %v294_v49 }
 0x6b3   :  { %v359_v13 = vpop.permute.xlu0 %358 }
 0x6b4   :  { %v361_v14 = vmul.f32 %v929_v12, %v359_v13 }
 0x6b6   :  { %363 = vrot.lane.b32.xlu1 %v361_v14, %s976_s3 }
 0x728   :  { %v364_v15 = vpop.permute.xlu1 %363 }
 0x729   :  { %v366_v16 = vadd.f32 %v364_v15, %v356_v8 }
 0x72b   :  { %930 = vtanh.f32 %v366_v16 }
 0x738   :  { %v931_v17 = vpop.eup %930 }
 0x739   :  { %369 = vrot.lane.b32.xlu0 %v931_v17, %s975_s7 }
 0x7ab   :  { %v370_v18 = vpop.permute.xlu0 %369 }
 0x7ac   :  { %v372_v19 = vmul.f32 %v929_v12, %v370_v18 }
 0x7ae   :  { %v373_v20 = vpack.c.bf16 %v372_v19, %v372_v19 }
 0x7b0   :  { %375 = vrot.lane.b32.xlu1 %v373_v20, %s976_s3 }
 0x822   :  { %v376_v21 = vpop.permute.xlu1 %375 }
 0x823   :  { %860 = vmatmul.mubr.msk.bf16.vlgmr.msra.gmra.mxu1 %vm160_vm3, %v376_v21 }
 0x824   :  { %872 = vmatpush3.bf16.msra.mxu1 %v1022_v3  ;;  %875 = vmatprep.mubr.msk.bf16.mxu1 %vm973_vm2, %v972_v1 }
 0x825   :  { %873 = vmatprep.subr.bf16.mxu1 %v972_v1 }
 0x828   :  { %874 = vmatpush3.bf16.msra.mxu1 %v1037_v6 }
 0x829   :  { %887 = vmatprep.subr.bf16.mxu1 %v972_v1 }
 0x8e3   :  { %v414_v23 = vpop.f32.mrf.mxu1 }
 0x8e4   :  { %v420_v24 = vadd.f32 %v414_v23, %v125_v22 }
 0x8e5   :  { %v861_v25 = vpop.f32.mrf.mxu1 }
 0x8e6   :  { %932 = vtanh.f32 %v420_v24  ;;  %v781_v29 = vmul.f32 -1.442695, %v420_v24  ;;  %v138_v24 = vadd.f32 %v1095_v57, %v1057_v9 }
 0x8e7   :  { %v417_v26 = vpop.f32.mrf.mxu1 }
 0x8e8   :  { %934 = vpow2.f32 %v781_v29 }
 0x8e9   :  { %v862_v27 = vpop.f32.mrf.mxu1 }
 0x8f3   :  { %v933_v28 = vpop.eup %932 }
 0x8f4   :  { %430 = vrot.lane.b32.xlu0 %v933_v28, %s975_s7 }
 0x8f5   :  { %v935_v30 = vpop.eup %934 }
 0x8f6   :  { %v424_v31 = vadd.f32 1.0, %v935_v30 }
 0x8f8   :  { %936 = vrcp.f32 %v424_v31 }
 0x905   :  { %v937_v33 = vpop.eup %936 }
 0x906   :  { %v428_v32 = vmul.f32 %v937_v33, %v366_v16 }
 0x966   :  { %v431_v34 = vpop.permute.xlu0 %430 }
 0x967   :  { %v433_v35 = vmul.f32 %v937_v33, %v431_v34 }
 0x969   :  { %435 = vrot.lane.b32.xlu1 %v433_v35, %s976_s3 }
 0x9db   :  { %v436_v36 = vpop.permute.xlu1 %435 }
 0x9dc   :  { %v438_v37 = vadd.f32 %v436_v36, %v428_v32 }
 0x9de   :  { %938 = vtanh.f32 %v438_v37 }
 0x9eb   :  { %v939_v38 = vpop.eup %938 }
 0x9ec   :  { %441 = vrot.lane.b32.xlu0 %v939_v38, %s975_s7 }
 0xa5e   :  { %v442_v39 = vpop.permute.xlu0 %441 }
 0xa5f   :  { %v444_v40 = vmul.f32 %v937_v33, %v442_v39 }
 0xa61   :  { %v445_v41 = vpack.c.bf16 %v444_v40, %v444_v40 }
 0xa63   :  { %447 = vrot.lane.b32.xlu1 %v445_v41, %s976_s3 }
 0xad5   :  { %v448_v42 = vpop.permute.xlu1 %447 }
 0xad6   :  { %868 = vmatmul.mubr.msk.bf16.vlgmr.msra.gmra.mxu0 %vm160_vm3, %v448_v42 }
 0xad7   :  { %880 = vmatpush3.bf16.msra.mxu0 %v1022_v3  ;;  %883 = vmatprep.mubr.msk.bf16.mxu0 %vm973_vm2, %v972_v1 }
 0xad8   :  { %881 = vmatprep.subr.bf16.mxu0 %v972_v1 }
 0xadb   :  { %882 = vmatpush3.bf16.msra.mxu0 %v1037_v6 }
 0xb96   :  { %v486_v44 = vpop.f32.mrf.mxu0 }
 0xb97   :  { %v492_v45 = vadd.f32 %v486_v44, %v130_v43  ;;  %v141_v44 = vadd.f32 %v1099_v59, %v1057_v9  ;;  %v790_v9 = vld [vmem:[%s1174_s4] ss:$0 sm:$0xff] }
 0xb98   :  { %v869_v46 = vpop.f32.mrf.mxu0 }
 0xb99   :  { %940 = vtanh.f32 %v492_v45  ;;  %v783_v50 = vmul.f32 -1.442695, %v492_v45 }
 0xb9a   :  { %v489_v47 = vpop.f32.mrf.mxu0 }
 0xb9b   :  { %942 = vpow2.f32 %v783_v50 }
 0xb9c   :  { %v870_v48 = vpop.f32.mrf.mxu0 }
 0xba6   :  { %v941_v49 = vpop.eup %940 }
 0xba7   :  { %502 = vrot.lane.b32.xlu0 %v941_v49, %s975_s7 }
 0xba8   :  { %v943_v51 = vpop.eup %942 }
 0xba9   :  { %v496_v52 = vadd.f32 1.0, %v943_v51 }
 0xbab   :  { %944 = vrcp.f32 %v496_v52 }
 0xbb8   :  { %v945_v53 = vpop.eup %944 }
 0xbb9   :  { %v500_v56 = vmul.f32 %v945_v53, %v438_v37 }
 0xc19   :  { %v503_v54 = vpop.permute.xlu0 %502 }
 0xc1a   :  { %v505_v55 = vmul.f32 %v945_v53, %v503_v54 }
 0xc1c   :  { %507 = vrot.lane.b32.xlu1 %v505_v55, %s976_s3 }
 0xc8e   :  { %v508_v58 = vpop.permute.xlu1 %507 }
 0xc8f   :  { %v510_v61 = vadd.f32 %v508_v58, %v500_v56 }
 0xc91   :  { %946 = vtanh.f32 %v510_v61 }
 0xc9e   :  { %v947_v62 = vpop.eup %946 }
 0xc9f   :  { %513 = vrot.lane.b32.xlu0 %v947_v62, %s975_s7 }
 0xd11   :  { %v514_v63 = vpop.permute.xlu0 %513 }
 0xd12   :  { %v516_v0 = vmul.f32 %v945_v53, %v514_v63  ;;  %v11_v63 = vstv %s1175_s5 }
 0xd13   :  { %12 = vst [vmem:[#allocation2] sm:$0x1] %v11_v63 }
 0xd14   :  { %v517_v2 = vpack.c.bf16 %v516_v0, %v516_v0 }
 0xd16   :  { %519 = vrot.lane.b32.xlu1 %v517_v2, %s976_s3 }
 0xd88   :  { %v520_v4 = vpop.permute.xlu1 %519 }
 0xd89   :  { %876 = vmatmul.mubr.msk.bf16.vlgmr.msra.gmra.mxu1 %vm160_vm3, %v520_v4 }
 0xd8a   :  { %888 = vmatpush3.bf16.msra.mxu1 %v1022_v3  ;;  %891 = vmatprep.mubr.msk.bf16.mxu1 %vm973_vm2, %v972_v1 }
 0xd8b   :  { %889 = vmatprep.subr.bf16.mxu1 %v972_v1 }
 0xd8e   :  { %890 = vmatpush3.bf16.msra.mxu1 %v1037_v6 }
 0xe49   :  { %v558_v7 = vpop.f32.mrf.mxu1 }
 0xe4a   :  { %v564_v10 = vadd.f32 %v558_v7, %v133_v5 }
 0xe4b   :  { %v877_v11 = vpop.f32.mrf.mxu1 }
 0xe4c   :  { %948 = vtanh.f32 %v564_v10  ;;  %v785_v3 = vmul.f32 -1.442695, %v564_v10  ;;  %v791_v11 = vld [vmem:[#allocation2] ss:$0 sm:$0xff] }
 0xe4d   :  { %v561_v12 = vpop.f32.mrf.mxu1 }
 0xe4e   :  { %950 = vpow2.f32 %v785_v3 }
 0xe4f   :  { %v878_v13 = vpop.f32.mrf.mxu1 }
 0xe59   :  { %v949_v14 = vpop.eup %948 }
 0xe5a   :  { %574 = vrot.lane.b32.xlu0 %v949_v14, %s975_s7 }
 0xe5b   :  { %v951_v8 = vpop.eup %950 }
 0xe5c   :  { %v568_v15 = vadd.f32 1.0, %v951_v8 }
 0xe5e   :  { %952 = vrcp.f32 %v568_v15 }
 0xe6b   :  { %v953_v1 = vpop.eup %952 }
 0xe6c   :  { %v572_v60 = vmul.f32 %v953_v1, %v510_v61 }
 0xecc   :  { %v575_v16 = vpop.permute.xlu0 %574 }
 0xecd   :  { %v577_v6 = vmul.f32 %v953_v1, %v575_v16 }
 0xecf   :  { %579 = vrot.lane.b32.xlu1 %v577_v6, %s976_s3 }
 0xf41   :  { %v580_v17 = vpop.permute.xlu1 %579 }
 0xf42   :  { %v582_v18 = vadd.f32 %v580_v17, %v572_v60 }
 0xf44   :  { %954 = vtanh.f32 %v582_v18 }
 0xf51   :  { %v955_v19 = vpop.eup %954 }
 0xf52   :  { %585 = vrot.lane.b32.xlu0 %v955_v19, %s975_s7 }
 0xfc4   :  { %v586_v20 = vpop.permute.xlu0 %585 }
 0xfc5   :  { %v588_v21 = vmul.f32 %v953_v1, %v586_v20 }
 0xfc7   :  { %v589_v22 = vpack.c.bf16 %v588_v21, %v588_v21 }
 0xfc9   :  { %591 = vrot.lane.b32.xlu1 %v589_v22, %s976_s3 }
0x103b   :  { %v592_v23 = vpop.permute.xlu1 %591 }
0x103c   :  { %884 = vmatmul.mubr.msk.bf16.vlgmr.msra.gmra.mxu0 %vm160_vm3, %v592_v23 }
0x10fc   :  { %v630_v25 = vpop.f32.mrf.mxu0 }
0x10fd   :  { %v636_v26 = vadd.f32 %v630_v25, %v138_v24 }
0x10fe   :  { %v885_v27 = vpop.f32.mrf.mxu0 }
0x10ff   :  { %956 = vtanh.f32 %v636_v26  ;;  %v787_v31 = vmul.f32 -1.442695, %v636_v26 }
0x1100   :  { %v633_v28 = vpop.f32.mrf.mxu0 }
0x1101   :  { %958 = vpow2.f32 %v787_v31 }
0x1102   :  { %v886_v29 = vpop.f32.mrf.mxu0 }
0x110c   :  { %v957_v30 = vpop.eup %956 }
0x110d   :  { %646 = vrot.lane.b32.xlu0 %v957_v30, %s975_s7 }
0x110e   :  { %v959_v33 = vpop.eup %958 }
0x110f   :  { %v640_v34 = vadd.f32 1.0, %v959_v33 }
0x1111   :  { %960 = vrcp.f32 %v640_v34 }
0x111e   :  { %v961_v35 = vpop.eup %960 }
0x111f   :  { %v644_v57 = vmul.f32 %v961_v35, %v582_v18 }
0x117f   :  { %v647_v32 = vpop.permute.xlu0 %646 }
0x1180   :  { %v649_v36 = vmul.f32 %v961_v35, %v647_v32 }
0x1182   :  { %651 = vrot.lane.b32.xlu1 %v649_v36, %s976_s3 }
0x11f4   :  { %v652_v37 = vpop.permute.xlu1 %651 }
0x11f5   :  { %v654_v38 = vadd.f32 %v652_v37, %v644_v57 }
0x11f7   :  { %962 = vtanh.f32 %v654_v38 }
0x1204   :  { %v963_v39 = vpop.eup %962 }
0x1205   :  { %657 = vrot.lane.b32.xlu0 %v963_v39, %s975_s7 }
0x1277   :  { %v658_v40 = vpop.permute.xlu0 %657 }
0x1278   :  { %v660_v41 = vmul.f32 %v961_v35, %v658_v40 }
0x127a   :  { %v661_v42 = vpack.c.bf16 %v660_v41, %v660_v41 }
0x127c   :  { %663 = vrot.lane.b32.xlu1 %v661_v42, %s976_s3 }
0x12ee   :  { %v664_v43 = vpop.permute.xlu1 %663 }
0x12ef   :  { %892 = vmatmul.mubr.msk.bf16.vlgmr.msra.gmra.mxu1 %vm160_vm3, %v664_v43 }
0x13af   :  { %v702_v45 = vpop.f32.mrf.mxu1 }
0x13b0   :  { %v708_v46 = vadd.f32 %v702_v45, %v141_v44 }
0x13b1   :  { %v893_v47 = vpop.f32.mrf.mxu1 }
0x13b2   :  { %964 = vtanh.f32 %v708_v46  ;;  %v789_v51 = vmul.f32 -1.442695, %v708_v46 }
0x13b3   :  { %v705_v48 = vpop.f32.mrf.mxu1 }
0x13b4   :  { %966 = vpow2.f32 %v789_v51 }
0x13b5   :  { %v894_v49 = vpop.f32.mrf.mxu1 }
0x13bf   :  { %v965_v50 = vpop.eup %964 }
0x13c0   :  { %718 = vrot.lane.b32.xlu0 %v965_v50, %s975_s7 }
0x13c1   :  { %v967_v52 = vpop.eup %966 }
0x13c2   :  { %v712_v53 = vadd.f32 1.0, %v967_v52 }
0x13c4   :  { %968 = vrcp.f32 %v712_v53 }
0x13d1   :  { %v969_v54 = vpop.eup %968 }
0x13d2   :  { %v716_v59 = vmul.f32 %v969_v54, %v654_v38 }
0x1432   :  { %v719_v55 = vpop.permute.xlu0 %718 }
0x1433   :  { %v721_v56 = vmul.f32 %v969_v54, %v719_v55 }
0x1435   :  { %723 = vrot.lane.b32.xlu1 %v721_v56, %s976_s3 }
0x1439   :  { %739 = vrot.lane.b32.xlu1 %v790_v9, %s977_s13 }
0x14a7   :  { %v724_v58 = vpop.permute.xlu1 %723 }
0x14a8   :  { %v726_v61 = vadd.f32 %v724_v58, %v716_v59 }
0x14aa   :  { %970 = vtanh.f32 %v726_v61 }
0x14ab   :  { %v740_v2 = vpop.permute.xlu1 %739 }
0x14b7   :  { %v971_v62 = vpop.eup %970 }
0x14b8   :  { %729 = vrot.lane.b32.xlu0 %v971_v62, %s975_s7 }
0x152a   :  { %v730_v0 = vpop.permute.xlu0 %729 }
0x152b   :  { %v732_v4 = vmul.f32 %v969_v54, %v730_v0 }
0x152d   :  { %v742_v5 = vmul.f32 %v740_v2, %v732_v4 }
0x152f   :  { %744 = vrot.lane.b32.xlu0 %v742_v5, %s976_s3 }
0x15a1   :  { %v745_v7 = vpop.permute.xlu0 %744 }
0x15a2   :  { %v747_v10 = vsel %vm160_vm3, %v745_v7, 0.0 }
0x15a3   :  { %748 = vadd.xlane.f32.xlu1 %v747_v10 }
0x162c   :  { %v749_v12 = vpop.xlane.xlu1 %748 }
0x162d   :  { %v757_v13 = vadd.f32 %v791_v11, %v749_v12 }
0x162f   :  { %759 = vst.msk [vmem:[%s1176_s6] sm:$0xff] %vm758_vm4, %v757_v13 }

</bundles_post_ra>
